<compile_context>
chip_gen: v6e
topology: v6e:2x2x1
jax: 0.10.0
libtpu: 0.0.40
codegen_flags: <defaults>
</compile_context>

<pallas_src>
import jax
import jax.numpy as jnp
import numpy as np
from jax import lax
from jax.experimental import pallas as pl
from jax.experimental.pallas import tpu as pltpu


def _round_up(x, m):
    return ((x + m - 1) // m) * m


def text_sentiment_kernel(tok_ref, start_ref, end_ref, emb_ref, w_ref, b_ref,
                          out_ref):
    """
    tok_ref   : VMEM (S_pad, 1)     int32    token ids (padding rows unused)
    start_ref : VMEM (B_pad, 1)     int32    bag start offsets
    end_ref   : VMEM (B_pad, 1)     int32    bag end offsets
    emb_ref   : VMEM (V_pad, E_pad) bfloat16 embedding table (zero padded)
    w_ref     : VMEM (E_pad, C_pad) bfloat16 fc weight, pre-transposed
    b_ref     : VMEM (1, C_pad)     float32  fc bias
    out_ref   : VMEM (B_pad, C_pad) float32  logits (padding sliced off outside)
    """
    s_pad = tok_ref.shape[0]
    b_pad = start_ref.shape[0]
    v_pad = emb_ref.shape[0]
    mxu_dtype = emb_ref.dtype

    # --- token one-hot (S_pad, V_pad): 0/1, exact in bf16 -------------------
    vocab_iota = lax.broadcasted_iota(jnp.int32, (s_pad, v_pad), 1)
    tok_onehot = (tok_ref[...] == vocab_iota).astype(mxu_dtype)

    # --- bag membership (B_pad, S_pad): 0/1, exact in bf16 ------------------
    tok_iota = lax.broadcasted_iota(jnp.int32, (b_pad, s_pad), 1)
    seg = jnp.logical_and(tok_iota >= start_ref[...],
                          tok_iota < end_ref[...]).astype(mxu_dtype)

    # --- per-bag vocab counts on the MXU (exact small integers) -------------
    bag_vocab = jnp.dot(seg, tok_onehot, preferred_element_type=jnp.float32)

    # --- bag sums over the embedding table on the MXU -----------------------
    bag_sum = jnp.dot(bag_vocab.astype(mxu_dtype), emb_ref[...],
                      preferred_element_type=jnp.float32)

    # --- mean (EmbeddingBag mode='mean'); empty bags -> zeros ---------------
    cnt = jnp.maximum(end_ref[...] - start_ref[...], 1).astype(jnp.float32)
    bag_mean = bag_sum / cnt

    # --- Linear: (B, E) @ (E, C) + bias --------------------------------------
    logits = jnp.dot(bag_mean.astype(w_ref.dtype), w_ref[...],
                     preferred_element_type=jnp.float32)
    out_ref[...] = logits + b_ref[...]


def text_sentiment_forward(text, offsets, emb_w, fc_w, fc_b):
    """text: (S,) int32 token stream; offsets: (B,) int32 bag starts
    (PyTorch EmbeddingBag semantics)."""
    seq_len = text.shape[0]
    num_bags = offsets.shape[0]
    vocab_size, embed_dim = emb_w.shape
    num_class = fc_w.shape[0]

    # Lane/sublane-dense padded sizes.
    s_pad = max(_round_up(seq_len, 128), 128)
    b_pad = max(_round_up(num_bags, 8), 8)
    v_pad = max(_round_up(vocab_size, 128), 128)
    e_pad = max(_round_up(embed_dim, 128), 128)
    c_pad = max(_round_up(num_class, 128), 128)

    # Token ids as a column vector (padding ids never selected by seg).
    tok = jnp.zeros((s_pad, 1), jnp.int32).at[:seq_len, 0].set(
        text.astype(jnp.int32))

    # Bag [start, end) columns; last bag ends at seq_len (PyTorch semantics).
    offs = offsets.astype(jnp.int32)
    ends = jnp.concatenate([offs[1:], jnp.array([seq_len], jnp.int32)])
    start_col = jnp.zeros((b_pad, 1), jnp.int32).at[:num_bags, 0].set(offs)
    end_col = jnp.zeros((b_pad, 1), jnp.int32).at[:num_bags, 0].set(ends)

    # bf16 weights, zero-padded and lane-dense; fc weight pre-transposed (E,C).
    emb_p = jnp.zeros((v_pad, e_pad), jnp.bfloat16).at[
        :vocab_size, :embed_dim].set(emb_w.astype(jnp.bfloat16))
    w_p = jnp.zeros((e_pad, c_pad), jnp.bfloat16).at[
        :embed_dim, :num_class].set(fc_w.T.astype(jnp.bfloat16))
    b_p = jnp.zeros((1, c_pad), jnp.float32).at[0, :num_class].set(
        fc_b.astype(jnp.float32))

    out_padded = pl.pallas_call(
        text_sentiment_kernel,
        out_shape=jax.ShapeDtypeStruct((b_pad, c_pad), jnp.float32),
        in_specs=[
            pl.BlockSpec(memory_space=pltpu.MemorySpace.VMEM),  # token ids
            pl.BlockSpec(memory_space=pltpu.MemorySpace.VMEM),  # bag starts
            pl.BlockSpec(memory_space=pltpu.MemorySpace.VMEM),  # bag ends
            pl.BlockSpec(memory_space=pltpu.MemorySpace.VMEM),  # embedding table
            pl.BlockSpec(memory_space=pltpu.MemorySpace.VMEM),  # fc weight (E,C)
            pl.BlockSpec(memory_space=pltpu.MemorySpace.VMEM),  # fc bias
        ],
        out_specs=pl.BlockSpec(memory_space=pltpu.MemorySpace.VMEM),
    )(tok, start_col, end_col, emb_p, w_p, b_p)

    # Slice the lane/sublane padding off outside the kernel.
    return out_padded[:num_bags, :num_class]


def reference_forward(text, offsets, emb_w, fc_w, fc_b):
    """Plain-JAX f32 reference mimicking nn.EmbeddingBag(mean) + nn.Linear."""
    seq_len = text.shape[0]
    starts = list(np.asarray(offsets))
    ends = starts[1:] + [seq_len]
    rows = []
    for s, e in zip(starts, ends):
        if e > s:
            rows.append(emb_w[text[s:e]].mean(axis=0))
        else:
            rows.append(jnp.zeros(emb_w.shape[1], emb_w.dtype))
    bag = jnp.stack(rows, axis=0)
    return bag @ fc_w.T + fc_b


if __name__ == "__main__":
    # Small shapes consistent with the module's forward pass.
    vocab_size, embed_dim, num_class = 64, 32, 4
    seq_len, num_bags = 16, 2

    key = jax.random.PRNGKey(0)
    k_emb, k_fc, k_text = jax.random.split(key, 3)

    # init_weights(): uniform(-1.5, 1.5) for embedding + fc weight, zero bias.
    initrange = 1.5
    emb_w = jax.random.uniform(k_emb, (vocab_size, embed_dim),
                               minval=-initrange, maxval=initrange,
                               dtype=jnp.float32)
    fc_w = jax.random.uniform(k_fc, (num_class, embed_dim),
                              minval=-initrange, maxval=initrange,
                              dtype=jnp.float32)
    fc_b = jnp.zeros((num_class,), dtype=jnp.float32)

    # Flat token id stream + bag start offsets (PyTorch EmbeddingBag form).
    text = jax.random.randint(k_text, (seq_len,), 0, vocab_size,
                              dtype=jnp.int32)
    offsets = jnp.array([0, 7], dtype=jnp.int32)   # 2 bags: lengths 7 and 9

    out = text_sentiment_forward(text, offsets, emb_w, fc_w, fc_b)
    out = jax.block_until_ready(out)

    # Reference is pure f32; the kernel stores the table / fc weight in bf16
    # (f32 accumulation), so compare with a bf16-quantization tolerance.
    ref = reference_forward(text, offsets, emb_w, fc_w, fc_b)
    np.testing.assert_allclose(np.asarray(out), np.asarray(ref),
                               rtol=2e-2, atol=1e-1)

    print("KERNEL_OK")
</pallas_src>

<mosaic_0001>
module attributes {stable_mosaic.version = 11 : i64} {
  func.func @text_sentiment_kernel(%arg0: memref<128x1xi32, #tpu.memory_space<vmem>>, %arg1: memref<8x1xi32, #tpu.memory_space<vmem>>, %arg2: memref<8x1xi32, #tpu.memory_space<vmem>>, %arg3: memref<128x128xbf16, #tpu.memory_space<vmem>>, %arg4: memref<128x128xbf16, #tpu.memory_space<vmem>>, %arg5: memref<1x128xf32, #tpu.memory_space<vmem>>, %arg6: memref<8x128xf32, #tpu.memory_space<vmem>>) attributes {dimension_semantics = [], scalar_prefetch = 0 : i64, scratch_operands = 0 : i64, tpu.core_type = #tpu.core_type<tc>} {
    %0 = tpu.iota {dimensions = array<i32: 1>} : vector<128x128xi32>
    %c0 = arith.constant 0 : index
    %c0_0 = arith.constant 0 : index
    %1 = vector.load %arg0[%c0, %c0_0] : memref<128x1xi32, #tpu.memory_space<vmem>>, vector<128x1xi32>
    %2 = vector.broadcast %1 : vector<128x1xi32> to vector<128x128xi32>
    %3 = arith.cmpi eq, %2, %0 : vector<128x128xi32>
    %4 = arith.extui %3 : vector<128x128xi1> to vector<128x128xi32>
    %5 = arith.sitofp %4 : vector<128x128xi32> to vector<128x128xf32>
    %6 = arith.truncf %5 : vector<128x128xf32> to vector<128x128xbf16>
    %7 = tpu.iota {dimensions = array<i32: 1>} : vector<8x128xi32>
    %c0_1 = arith.constant 0 : index
    %c0_2 = arith.constant 0 : index
    %8 = vector.load %arg1[%c0_1, %c0_2] : memref<8x1xi32, #tpu.memory_space<vmem>>, vector<8x1xi32>
    %9 = vector.broadcast %8 : vector<8x1xi32> to vector<8x128xi32>
    %10 = arith.cmpi sge, %7, %9 : vector<8x128xi32>
    %c0_3 = arith.constant 0 : index
    %c0_4 = arith.constant 0 : index
    %11 = vector.load %arg2[%c0_3, %c0_4] : memref<8x1xi32, #tpu.memory_space<vmem>>, vector<8x1xi32>
    %12 = vector.broadcast %11 : vector<8x1xi32> to vector<8x128xi32>
    %13 = arith.cmpi slt, %7, %12 : vector<8x128xi32>
    %14 = arith.andi %10, %13 : vector<8x128xi1>
    %15 = arith.extui %14 : vector<8x128xi1> to vector<8x128xi32>
    %16 = arith.sitofp %15 : vector<8x128xi32> to vector<8x128xf32>
    %17 = arith.truncf %16 : vector<8x128xf32> to vector<8x128xbf16>
    %cst = arith.constant dense<0.000000e+00> : vector<8x128xf32>
    %18 = tpu.matmul %17, %6, %cst {dimension_numbers = #tpu.dot_dimension_numbers<[1], [0], [0], [1], [0, 0, 1, 1], [], []>} : vector<8x128xbf16>, vector<128x128xbf16>, vector<8x128xf32> -> vector<8x128xf32>
    %19 = arith.truncf %18 : vector<8x128xf32> to vector<8x128xbf16>
    %c0_5 = arith.constant 0 : index
    %c0_6 = arith.constant 0 : index
    %20 = vector.load %arg3[%c0_5, %c0_6] : memref<128x128xbf16, #tpu.memory_space<vmem>>, vector<128x128xbf16>
    %cst_7 = arith.constant dense<0.000000e+00> : vector<8x128xf32>
    %21 = tpu.matmul %19, %20, %cst_7 {dimension_numbers = #tpu.dot_dimension_numbers<[1], [0], [0], [1], [0, 0, 1, 1], [], []>} : vector<8x128xbf16>, vector<128x128xbf16>, vector<8x128xf32> -> vector<8x128xf32>
    %c0_8 = arith.constant 0 : index
    %c0_9 = arith.constant 0 : index
    %22 = vector.load %arg2[%c0_8, %c0_9] : memref<8x1xi32, #tpu.memory_space<vmem>>, vector<8x1xi32>
    %c0_10 = arith.constant 0 : index
    %c0_11 = arith.constant 0 : index
    %23 = vector.load %arg1[%c0_10, %c0_11] : memref<8x1xi32, #tpu.memory_space<vmem>>, vector<8x1xi32>
    %24 = arith.subi %22, %23 : vector<8x1xi32>
    %c1_i32 = arith.constant 1 : i32
    %25 = vector.broadcast %c1_i32 : i32 to vector<8x1xi32>
    %26 = arith.maxsi %24, %25 : vector<8x1xi32>
    %27 = arith.sitofp %26 : vector<8x1xi32> to vector<8x1xf32>
    %28 = vector.broadcast %27 : vector<8x1xf32> to vector<8x128xf32>
    %29 = arith.divf %21, %28 : vector<8x128xf32>
    %30 = arith.truncf %29 : vector<8x128xf32> to vector<8x128xbf16>
    %c0_12 = arith.constant 0 : index
    %c0_13 = arith.constant 0 : index
    %31 = vector.load %arg4[%c0_12, %c0_13] : memref<128x128xbf16, #tpu.memory_space<vmem>>, vector<128x128xbf16>
    %cst_14 = arith.constant dense<0.000000e+00> : vector<8x128xf32>
    %32 = tpu.matmul %30, %31, %cst_14 {dimension_numbers = #tpu.dot_dimension_numbers<[1], [0], [0], [1], [0, 0, 1, 1], [], []>} : vector<8x128xbf16>, vector<128x128xbf16>, vector<8x128xf32> -> vector<8x128xf32>
    %c0_15 = arith.constant 0 : index
    %c0_16 = arith.constant 0 : index
    %33 = vector.load %arg5[%c0_15, %c0_16] : memref<1x128xf32, #tpu.memory_space<vmem>>, vector<1x128xf32>
    %34 = vector.broadcast %33 : vector<1x128xf32> to vector<8x128xf32>
    %35 = arith.addf %32, %34 : vector<8x128xf32>
    %c0_17 = arith.constant 0 : index
    %c0_18 = arith.constant 0 : index
    %36 = vector.load %arg6[%c0_17, %c0_18] : memref<8x128xf32, #tpu.memory_space<vmem>>, vector<8x128xf32>
    tpu.vector_store %arg6[%c0_17, %c0_18], %35 {strides = array<i32>} : memref<8x128xf32, #tpu.memory_space<vmem>>, vector<8x128xf32>,
    return
  }
}

</mosaic_0001>

<bundles_post_ra>
// kernel: tpu_custom_call.1
= control target key start
LH: loop header
LB: loop body
LE: loop exit
PB: predicated region body
PF: predicated region fallthrough
CT: control target
= control target key end

     0   :  { %v630_v2 = vmov 0   ;;  %v631_v5 = vmov 0.0   ;;  %s808_s0 = inlined_call_operand.vmem [shape: s32[128,1], index: 0, kind: input, shape index: {}]   ;;  %s809_s1 = inlined_call_operand.vmem [shape: s32[8,1], index: 1, kind: input, shape index: {}]   ;;  %s810_s2 = inlined_call_operand.vmem [shape: s32[8,1], index: 2, kind: input, shape index: {}]   ;;  %s811_s3 = inlined_call_operand.vmem [shape: bf16[128,128], index: 3, kind: input, shape index: {}]   ;;  %s812_s4 = inlined_call_operand.vmem [shape: bf16[128,128], index: 4, kind: input, shape index: {}]   ;;  %s813_s5 = inlined_call_operand.vmem [shape: f32[1,128], index: 5, kind: input, shape index: {}]   ;;  %s814_s6 = inlined_call_operand.hbm [shape: f32[8,128], index: 6, kind: output, shape index: {}]  }
   0x1   :  { %v41_v0 = vld [vmem:[%s808_s0 + $0x70] sm:$0xff]  ;;  %v39_v1 = vld [vmem:[%s808_s0 + $0x60] sm:$0xff]  ;;  %589 = vset.pattern.permute.xlu1 %v630_v2  ;;  %588 = vset.pattern.permute.xlu0 %v630_v2  ;;  %v42_v3 = vld [vmem:[%s808_s0 + $0x78] sm:$0xff] }
   0x2   :  { %86 = vperm.xlu0 %588, %v41_v0   ;;  %80 = vperm.xlu1 %589, %v39_v1   ;;  %v40_v4 = vld [vmem:[%s808_s0 + $0x68] sm:$0xff]  ;;  %v38_v6 = vld [vmem:[%s808_s0 + $0x58] sm:$0xff]  ;;  %v37_v7 = vld [vmem:[%s808_s0 + $0x50] sm:$0xff] }
   0x3   :  { %523 = vmatprep.subr.bf16.mxu0 %v631_v5  ;;  %543 = vmatprep.subr.bf16.mxu1 %v631_v5  ;;  %v36_v8 = vld [vmem:[%s808_s0 + $0x48] sm:$0xff]  ;;  %v35_v9 = vld [vmem:[%s808_s0 + $0x40] sm:$0xff]  ;;  %v34_v10 = vld [vmem:[%s808_s0 + $0x38] sm:$0xff] }
   0x4   :  { %v33_v11 = vld [vmem:[%s808_s0 + $0x30] sm:$0xff] }
   0x6   :  { %89 = vperm.xlu0 %588, %v42_v3   ;;  %83 = vperm.xlu1 %589, %v40_v4  }
   0xa   :  { %77 = vperm.xlu1 %589, %v38_v6   ;;  %74 = vperm.xlu0 %588, %v37_v7  }
   0xe   :  { %71 = vperm.xlu1 %589, %v36_v8   ;;  %68 = vperm.xlu0 %588, %v35_v9  }
   0xf   :  { %11 = vsyncpa [#allocation3], 0  ;;  %v32_v12 = vld [vmem:[%s808_s0 + $0x28] sm:$0xff]  ;;  %v31_v13 = vld [vmem:[%s808_s0 + $0x20] sm:$0xff]  ;;  %vm632_vm1 = vmmov 0   ;;  %v25_v30 = vlaneseq  ;;  %s634_s12 = smov [#allocation2]  }
  0x10   :  { %v152_v14 = vld [vmem:[%s810_s2] sm:$0xff]  ;;  %v30_v16 = vld [vmem:[%s808_s0 + $0x18] sm:$0xff]  ;;  %v29_v17 = vld [vmem:[%s808_s0 + $0x10] sm:$0xff]  ;;  %539 = vmatprep.mubr.msk.bf16.mxu0 %vm632_vm1, %v631_v5  ;;  %559 = vmatprep.mubr.msk.bf16.mxu1 %vm632_vm1, %v631_v5  ;;  %v633_v36 = vmov 1.0|1.0   ;;  %s436_s13 = sshll.u32 %s634_s12, 4  ;;  %s437_s13 = int_to_ptr.vmem [resolvable:$true] %s436_s13 }
  0x11   :  { %v147_v15 = vld [vmem:[%s809_s1] sm:$0xff]  ;;  %v28_v19 = vld [vmem:[%s808_s0 + $0x8] sm:$0xff]  ;;  %v590_v23 = vld [vmem:[%s811_s3 + $0x38] sm:$0xff]   ;;  %v26_v33 = vand.u32 127, %v25_v30  ;;  %p613_p1 = scmp.lt.s32.totalorder %s437_s13, %s437_s13 }
  0x12   :  { %65 = vperm.xlu1 %589, %v34_v10   ;;  %62 = vperm.xlu0 %588, %v33_v11   ;;  %v306_v18 = vsub.s32 %v152_v14, %v147_v15  ;;  %v27_v20 = vld [vmem:[%s808_s0] sm:$0xff]  ;;  %v591_v24 = vld [vmem:[%s811_s3 + $0x30] sm:$0xff]   ;;  %v592_v25 = vld [vmem:[%s811_s3 + $0x28] sm:$0xff]  }
  0x13   :  { %544 = vmatpush3.bf16.msra.mxu1 %v590_v23  ;;  %v593_v26 = vld [vmem:[%s811_s3 + $0x20] sm:$0xff]   ;;  %v594_v27 = vld [vmem:[%s811_s3 + $0x18] sm:$0xff]   ;;  %v595_v28 = vld [vmem:[%s811_s3 + $0x10] sm:$0xff]  }
  0x14   :  { %vm307_vm0 = vcmp.gt.s32.totalorder %v306_v18, 1  ;;  %545 = vmatprep.subr.bf16.mxu1 %v631_v5  ;;  %v596_v29 = vld [vmem:[%s811_s3 + $0x8] sm:$0xff]   ;;  %v597_v51 = vld [vmem:[%s811_s3] sm:$0xff]   ;;  %v598_v52 = vld [vmem:[%s812_s4 + $0x38] sm:$0xff]  }
  0x15   :  { %v308_v21 = vsel %vm307_vm0, %v306_v18, 1  ;;  %v599_v53 = vld [vmem:[%s812_s4 + $0x30] sm:$0xff]   ;;  %v600_v54 = vld [vmem:[%s812_s4 + $0x28] sm:$0xff]   ;;  %v601_v55 = vld [vmem:[%s812_s4 + $0x20] sm:$0xff]  }
  0x16   :  { %59 = vperm.xlu1 %589, %v32_v12   ;;  %56 = vperm.xlu0 %588, %v31_v13   ;;  %v309_v22 = vcvt.s32.f32 %v308_v21  ;;  %v602_v56 = vld [vmem:[%s812_s4 + $0x18] sm:$0xff]   ;;  %v603_v57 = vld [vmem:[%s812_s4 + $0x10] sm:$0xff]   ;;  %v604_v58 = vld [vmem:[%s812_s4 + $0x8] sm:$0xff]  }
  0x17   :  { %546 = vmatpush3.bf16.msra.mxu1 %v591_v24  ;;  %v605_v0 = vld [vmem:[%s812_s4] sm:$0xff]   ;;  %s608_s4 = scalar_lea.vmem %s437_s13, 128 }
  0x18   :  { %547 = vmatprep.subr.bf16.mxu1 %v631_v5  ;;  %v487_v9 = vld [vmem:[%s813_s5] ss:$0 sm:$0xff]  ;;  %p609_p0 = scmp.ne.s32.totalorder %s437_s13, %s608_s4  ;;  %p614_p2 = scmp.lt.s32.totalorder %s608_s4, %s608_s4 }
  0x1a   :  { %53 = vperm.xlu1 %589, %v30_v16   ;;  %50 = vperm.xlu0 %588, %v29_v17   ;;  %p615_p3 = por %p614_p2, %p613_p1 }
  0x1b   :  { %548 = vmatpush3.bf16.msra.mxu1 %v592_v25 }
  0x1c   :  { %549 = vmatprep.subr.bf16.mxu1 %v631_v5  ;;  %p616_p4 = pnand %p615_p3, %p609_p0 }
  0x1e   :  { %47 = vperm.xlu1 %589, %v28_v19   ;;  %44 = vperm.xlu0 %588, %v27_v20  }
  0x1f   :  { %550 = vmatpush3.bf16.msra.mxu1 %v593_v26 }
  0x20   :  { %551 = vmatprep.subr.bf16.mxu1 %v631_v5 }
  0x22   :  { %154 = vperm.xlu1 %589, %v152_v14   ;;  %149 = vperm.xlu0 %588, %v147_v15  }
  0x23   :  { %552 = vmatpush3.bf16.msra.mxu1 %v594_v27 }
  0x24   :  { %553 = vmatprep.subr.bf16.mxu1 %v631_v5 }
  0x26   :  { %312 = vperm.xlu0 %588, %v309_v22  }
  0x27   :  { %554 = vmatpush3.bf16.msra.mxu1 %v595_v28 }
  0x28   :  { %555 = vmatprep.subr.bf16.mxu1 %v631_v5 }
  0x2b   :  { %556 = vmatpush3.bf16.msra.mxu1 %v596_v29 }
  0x2c   :  { %557 = vmatprep.subr.bf16.mxu1 %v631_v5 }
  0x2f   :  { %558 = vmatpush3.bf16.msra.mxu1 %v597_v51 }
  0x7d   :  { %v87_v31 = vpop.permute.xlu0 %86  ;;  %v81_v32 = vpop.permute.xlu1 %80 }
  0x7e   :  { %vm105_vm2 = vcmp.eq.s32.totalorder %v87_v31, %v26_v33  ;;  %vm103_vm6 = vcmp.eq.s32.totalorder %v81_v32, %v26_v33 }
  0x81   :  { %v90_v34 = vpop.permute.xlu0 %89  ;;  %v84_v35 = vpop.permute.xlu1 %83 }
  0x82   :  { %vm106_vm3 = vcmp.eq.s32.totalorder %v90_v34, %v26_v33  ;;  %vm104_vm5 = vcmp.eq.s32.totalorder %v84_v35, %v26_v33 }
  0x83   :  { %vm461_vm4 = vmpackc.low %vm106_vm3, %vm105_vm2 }
  0x84   :  { %524 = vmatpush3.bf16.msk.msra.mxu0 %vm461_vm4, %v633_v36  ;;  %vm463_vm7 = vmpackc.low %vm104_vm5, %vm103_vm6 }
  0x85   :  { %v78_v37 = vpop.permute.xlu1 %77  ;;  %v75_v38 = vpop.permute.xlu0 %74  ;;  %525 = vmatprep.subr.bf16.mxu0 %v631_v5 }
  0x86   :  { %vm102_vm8 = vcmp.eq.s32.totalorder %v78_v37, %v26_v33  ;;  %vm101_vm9 = vcmp.eq.s32.totalorder %v75_v38, %v26_v33 }
  0x87   :  { %vm465_vm10 = vmpackc.low %vm102_vm8, %vm101_vm9 }
  0x88   :  { %526 = vmatpush3.bf16.msk.msra.mxu0 %vm463_vm7, %v633_v36 }
  0x89   :  { %v72_v39 = vpop.permute.xlu1 %71  ;;  %v69_v40 = vpop.permute.xlu0 %68  ;;  %527 = vmatprep.subr.bf16.mxu0 %v631_v5 }
  0x8a   :  { %vm100_vm11 = vcmp.eq.s32.totalorder %v72_v39, %v26_v33  ;;  %vm99_vm12 = vcmp.eq.s32.totalorder %v69_v40, %v26_v33 }
  0x8b   :  { %vm467_vm13 = vmpackc.low %vm100_vm11, %vm99_vm12 }
  0x8c   :  { %528 = vmatpush3.bf16.msk.msra.mxu0 %vm465_vm10, %v633_v36 }
  0x8d   :  { %v66_v41 = vpop.permute.xlu1 %65  ;;  %v63_v42 = vpop.permute.xlu0 %62  ;;  %529 = vmatprep.subr.bf16.mxu0 %v631_v5 }
  0x8e   :  { %vm98_vm14 = vcmp.eq.s32.totalorder %v66_v41, %v26_v33  ;;  %vm97_vm15 = vcmp.eq.s32.totalorder %v63_v42, %v26_v33 }
  0x8f   :  { %vm469_vm0 = vmpackc.low %vm98_vm14, %vm97_vm15 }
  0x90   :  { %530 = vmatpush3.bf16.msk.msra.mxu0 %vm467_vm13, %v633_v36 }
  0x91   :  { %v60_v43 = vpop.permute.xlu1 %59  ;;  %v57_v44 = vpop.permute.xlu0 %56  ;;  %531 = vmatprep.subr.bf16.mxu0 %v631_v5 }
  0x92   :  { %vm96_vm2 = vcmp.eq.s32.totalorder %v60_v43, %v26_v33  ;;  %vm95_vm3 = vcmp.eq.s32.totalorder %v57_v44, %v26_v33 }
  0x93   :  { %vm471_vm4 = vmpackc.low %vm96_vm2, %vm95_vm3 }
  0x94   :  { %532 = vmatpush3.bf16.msk.msra.mxu0 %vm469_vm0, %v633_v36 }
  0x95   :  { %v54_v45 = vpop.permute.xlu1 %53  ;;  %v51_v46 = vpop.permute.xlu0 %50  ;;  %533 = vmatprep.subr.bf16.mxu0 %v631_v5 }
  0x96   :  { %vm94_vm5 = vcmp.eq.s32.totalorder %v54_v45, %v26_v33  ;;  %vm93_vm6 = vcmp.eq.s32.totalorder %v51_v46, %v26_v33 }
  0x97   :  { %vm473_vm7 = vmpackc.low %vm94_vm5, %vm93_vm6 }
  0x98   :  { %534 = vmatpush3.bf16.msk.msra.mxu0 %vm471_vm4, %v633_v36 }
  0x99   :  { %v48_v47 = vpop.permute.xlu1 %47  ;;  %v45_v48 = vpop.permute.xlu0 %44  ;;  %535 = vmatprep.subr.bf16.mxu0 %v631_v5 }
  0x9a   :  { %vm92_vm8 = vcmp.eq.s32.totalorder %v48_v47, %v26_v33  ;;  %vm91_vm9 = vcmp.eq.s32.totalorder %v45_v48, %v26_v33 }
  0x9b   :  { %vm475_vm10 = vmpackc.low %vm92_vm8, %vm91_vm9 }
  0x9c   :  { %536 = vmatpush3.bf16.msk.msra.mxu0 %vm473_vm7, %v633_v36 }
  0x9d   :  { %v155_v49 = vpop.permute.xlu1 %154  ;;  %v150_v50 = vpop.permute.xlu0 %149  ;;  %537 = vmatprep.subr.bf16.mxu0 %v631_v5 }
  0x9e   :  { %vm156_vm11 = vcmp.lt.s32.totalorder %v26_v33, %v155_v49  ;;  %vm151_vm12 = vcmp.ge.s32.totalorder %v26_v33, %v150_v50 }
  0x9f   :  { %vm157_vm13 = vmand %vm151_vm12, %vm156_vm11 }
  0xa0   :  { %538 = vmatpush3.bf16.msk.msra.mxu0 %vm475_vm10, %v633_v36  ;;  %vm477_vm14 = vmpackc.low %vm157_vm13, %vm157_vm13 }
  0xa1   :  { %563 = vmatprep.subr.bf16.mxu0 %v631_v5  ;;  %v313_v1 = vpop.permute.xlu0 %312 }
  0xa2   :  { %606 = vrcp.f32 %v313_v1 }
  0xa3   :  { %540 = vmatmul.mubr.msk.bf16.vlgmr.msra.gmra.mxu0 %vm477_vm14, %v633_v36 }
  0xa4   :  { %579 = vmatprep.mubr.msk.bf16.mxu0 %vm632_vm1, %v631_v5  ;;  %564 = vmatpush3.bf16.msra.mxu0 %v598_v52 }
  0xa5   :  { %565 = vmatprep.subr.bf16.mxu0 %v631_v5 }
  0xa8   :  { %566 = vmatpush3.bf16.msra.mxu0 %v599_v53 }
  0xa9   :  { %567 = vmatprep.subr.bf16.mxu0 %v631_v5 }
  0xac   :  { %568 = vmatpush3.bf16.msra.mxu0 %v600_v54 }
  0xad   :  { %569 = vmatprep.subr.bf16.mxu0 %v631_v5 }
  0xaf   :  { %v607_v2 = vpop.eup %606 }
  0xb0   :  { %570 = vmatpush3.bf16.msra.mxu0 %v601_v55 }
  0xb1   :  { %571 = vmatprep.subr.bf16.mxu0 %v631_v5 }
  0xb4   :  { %572 = vmatpush3.bf16.msra.mxu0 %v602_v56 }
  0xb5   :  { %573 = vmatprep.subr.bf16.mxu0 %v631_v5 }
  0xb8   :  { %574 = vmatpush3.bf16.msra.mxu0 %v603_v57 }
  0xb9   :  { %575 = vmatprep.subr.bf16.mxu0 %v631_v5 }
  0xbc   :  { %576 = vmatpush3.bf16.msra.mxu0 %v604_v58 }
  0xbd   :  { %577 = vmatprep.subr.bf16.mxu0 %v631_v5 }
  0xc0   :  { %578 = vmatpush3.bf16.msra.mxu0 %v605_v0 }
 0x163   :  { %v195_v59 = vpop.f32.mrf.mxu0 }
 0x164   :  { %v201_v60 = vpack.c.bf16 %v195_v59, %v195_v59 }
 0x165   :  { %v541_v61 = vpop.f32.mrf.mxu0 }
 0x166   :  { %560 = vmatmul.mubr.bf16.vlgmr.msra.gmra.mxu1 %v201_v60 }
 0x167   :  { %v198_v62 = vpop.f32.mrf.mxu0 }
 0x169   :  { %v542_v63 = vpop.f32.mrf.mxu0 }
 0x226   :  { %v300_v3 = vpop.f32.mrf.mxu1 }
 0x227   :  { %v316_v4 = vmul.f32 %v607_v2, %v300_v3 }
 0x228   :  { %v561_v6 = vpop.f32.mrf.mxu1 }
 0x229   :  { %v317_v7 = vpack.c.bf16 %v316_v4, %v316_v4 }
 0x22a   :  { %v303_v8 = vpop.f32.mrf.mxu1 }
 0x22b   :  { %580 = vmatmul.mubr.bf16.vlgmr.msra.gmra.mxu0 %v317_v7 }
 0x22c   :  { %v562_v5 = vpop.f32.mrf.mxu1 }
 0x2eb   :  { %v423_v10 = vpop.f32.mrf.mxu0 }
 0x2ec   :  { %v424_v11 = vadd.f32 %v487_v9, %v423_v10 }
 0x2ed   :  { %v581_v12 = vpop.f32.mrf.mxu0 }
 0x2ee   :  { %429 = vst [vmem:[#allocation2] sm:$0xff] %v424_v11 }
 0x2ef   :  { %v426_v13 = vpop.f32.mrf.mxu0 }
 0x2f0   :  { %619 = shalt.err (!%p616_p4)
}
 0x2f1   :  { %439 = dma.vmem_to_hbm [thread:$0]  %s437_s13, 128, %s814_s6, [#allocation3]   ;;  %v582_v14 = vpop.f32.mrf.mxu0 }
 0x2f2   :  { %628 = dma.done.wait [#allocation3], 128  }
 0x2f3   :  { %629 = vsyncadd [#allocation3], 4294967168 }
 0x2f4   :  { %443 = vsyncpa [#allocation3], 1 }

</bundles_post_ra>
